<compile_context>
chip_gen: v7x
topology: tpu7x:2x2x1
jax: 0.10.0
libtpu: 0.0.40
codegen_flags: <defaults>
</compile_context>

<pallas_src>
import functools

import jax
import jax.numpy as jnp
from jax.experimental import pallas as pl
from jax.experimental.pallas import tpu as pltpu


def _softmax_lastaxis(logits, approx_recip):
    # max-subtracted exact exp; denominator reciprocal goes to the EUP slot.
    m = jnp.max(logits, axis=-1, keepdims=True)
    e = jnp.exp(logits - m)
    s = jnp.sum(e, axis=-1, keepdims=True)
    return e * pl.reciprocal(s, approx=approx_recip)


def _tokenizer_kernel(*refs, num_refine, b_tile, write_attn, approx_recip):
    """Fused tokenizer forward for a tile of `b_tile` batch elements.

    refs layout:
      w_attn (T, C)            compute dtype, resident
      x      (bt, C, N)        ORIGINAL input dtype (cast per element in-kernel)
      [w_maps (L, C, C)]       stacked W^T, compute dtype, resident  (if L > 0)
      tokens_out (bt, T, C)
      [attn_out  (bt, T, N)]   lane-dense (N multiple of 128 -> full-lane vst)
    """
    idx = 0
    w_ref = refs[idx]; idx += 1
    x_ref = refs[idx]; idx += 1
    wm_ref = None
    if num_refine > 0:
        wm_ref = refs[idx]; idx += 1
    tok_ref = refs[idx]; idx += 1
    att_ref = refs[idx] if write_attn else None

    w = w_ref[...]                                   # (T, C), compute dtype
    cd = w.dtype

    def body(i, carry):
        # Cast one batch element at a time inside the kernel: the HBM read of
        # x stays in its original dtype (no wrapper-side cast pass).
        x_b = x_ref[i].astype(cd)                    # (C, N)

        # conv1d(k=1): logits = W @ x -> (T, N); softmax over spatial N (lanes)
        logits = jnp.dot(w, x_b, preferred_element_type=jnp.float32)
        p = _softmax_lastaxis(logits, approx_recip)  # (T, N), f32

        # tokens (T, C) = p @ x^T : both operands contract their trailing N.
        # TODO(synk): confirm via pl.lower_as_mlir that Mosaic takes the MXU
        # transposed-RHS path here (no explicit relayout of the (C, N) slab).
        tokens = jax.lax.dot_general(
            p.astype(cd), x_b, (((1,), (1,)), ((), ())),
            preferred_element_type=jnp.float32)      # (T, C), f32

        for l in range(num_refine):
            wl_t = wm_ref[l]                         # (C_in, C_out) = W^T (pre-transposed)
            tokens = jnp.dot(tokens.astype(cd), wl_t,
                             preferred_element_type=jnp.float32)   # (T, C)
            logits = jnp.dot(tokens.astype(cd), x_b,
                             preferred_element_type=jnp.float32)   # (T, N)
            p = _softmax_lastaxis(logits, approx_recip)
            tokens = jax.lax.dot_general(
                p.astype(cd), x_b, (((1,), (1,)), ((), ())),
                preferred_element_type=jnp.float32)

        tok_ref[i] = tokens.astype(tok_ref.dtype)    # (T, C) slab
        if write_attn:
            att_ref[i] = p.astype(att_ref.dtype)     # (T, N): lane-dense store
        return carry

    jax.lax.fori_loop(0, b_tile, body, None)


def tokenizer_forward(x, w_attn, w_maps=None, *, b_tile=8,
                      compute_dtype=jnp.bfloat16, approx_recip=True,
                      attn_layout="nt", return_attn=True):
    """Pallas implementation of Tokenizer.forward.

    x       : (B, C, H, W)  NCHW, any float dtype (read in place, cast in-kernel)
    w_attn  : (T, C)        nn.Conv1d(C, T, 1, bias=False).weight[:, :, 0]
    w_maps  : optional (L-1, C, C) stacked nn.Linear(C, C, bias=False).weight
    compute_dtype : MXU input / kernel output dtype.  Defaults to bf16 (halves
        HBM traffic for the dominant attn writeback; accumulation and softmax
        stay f32).  Pass jnp.float32 for exact-parity testing.
    approx_recip  : EUP approximate reciprocal for the softmax denominator
        (~1e-3 rel. error, essentially free).  Set False for exact parity.
    attn_layout   : "nt" (default) returns attn as (B, N, T) like PyTorch
        (costs one XLA transpose of the large attn output); "tn" returns the
        kernel-native lane-dense (B, T, N) with no extra HBM pass.  Note
        Tokenizer.reverse consumes attn.permute(0, 2, 1) == the "tn" layout.
    return_attn   : if False, attn is neither written nor returned (returns
        (tokens, None)); saves the dominant output traffic when unused.

    returns (tokens (B, C, T), attn) — tokens always matches PyTorch.
    """
    if attn_layout not in ("nt", "tn"):
        raise ValueError("attn_layout must be 'nt' or 'tn'")
    B, C, H, W = x.shape
    N = H * W
    T = w_attn.shape[0]
    cdt = jnp.dtype(compute_dtype)
    x_item = jnp.dtype(x.dtype).itemsize
    out_item = cdt.itemsize
    num_refine = 0 if w_maps is None else int(w_maps.shape[0])

    xf = x.reshape(B, C, N)                 # metadata-only reshape, no cast/copy
    wA = w_attn.astype(cdt)                 # tiny, resident

    # --- generation-aware VMEM budget (v5e/v6e: 128 MiB, v7x: 64 MiB) -------
    try:
        vmem_cap = int(getattr(pltpu.get_tpu_info(), "vmem_capacity_bytes",
                               64 << 20))
    except Exception:
        vmem_cap = 64 << 20                 # conservative (v7x) fallback
    vmem_budget = int(0.75 * vmem_cap)

    def vmem_estimate(bt):
        io = 2 * bt * C * N * x_item                        # x block (dbl-buf)
        io += 2 * bt * T * C * out_item                     # tokens out
        if return_attn:
            io += 2 * bt * T * N * out_item                 # attn out
        io += 2 * (T * C + num_refine * C * C) * out_item   # resident weights
        # one batch element's f32 temporaries (fori_loop bounds live ranges)
        interm = 4 * (2 * T * N + 2 * T * C) + C * N * max(out_item, 4)
        return io + interm + (2 << 20)

    # --- batch tile: divisor of B, >= 2 grid steps, fits the VMEM budget ----
    req = max(1, min(int(b_tile), B))
    if B >= 2:
        req = min(req, B // 2)   # keep >=2 grid steps: v7x dual-TC + pipelining
    req = max(1, req)
    bt = 1
    for d in range(req, 0, -1):
        if B % d == 0 and vmem_estimate(d) <= vmem_budget:
            bt = d
            break
    # TODO(synk): for very large C*N (bt=1 still over budget) tile N with an
    # online-softmax (flash-style) accumulation instead of shrinking bt.

    grid = (B // bt,)

    in_specs = [
        pl.BlockSpec((T, C), lambda b: (0, 0)),            # w_attn (resident)
        pl.BlockSpec((bt, C, N), lambda b: (b, 0, 0)),     # x: bt batches/step
    ]
    args = [wA, xf]
    if num_refine > 0:
        # Pre-transpose host-side (free, tiny) so the refinement Linear is a
        # canonical tokens @ W^T matmul (contraction on the RHS major dim).
        wMt = jnp.transpose(w_maps, (0, 2, 1)).astype(cdt)   # (L, C_in, C_out)
        L = num_refine
        in_specs.append(pl.BlockSpec((L, C, C), lambda b: (0, 0, 0)))
        args.append(wMt)

    out_shape = [jax.ShapeDtypeStruct((B, T, C), cdt)]
    out_specs = [pl.BlockSpec((bt, T, C), lambda b: (b, 0, 0))]
    if return_attn:
        out_shape.append(jax.ShapeDtypeStruct((B, T, N), cdt))
        out_specs.append(pl.BlockSpec((bt, T, N), lambda b: (b, 0, 0)))

    kernel = functools.partial(_tokenizer_kernel, num_refine=num_refine,
                               b_tile=bt, write_attn=return_attn,
                               approx_recip=approx_recip)

    vmem_limit = int(min(int(0.9 * vmem_cap),
                         max(32 << 20, vmem_estimate(bt) + (4 << 20))))

    flops = B * (4 * T * C * N + num_refine * (2 * T * C * C + 4 * T * C * N))
    transc = B * T * N * (1 + num_refine)
    bytes_acc = (B * C * N * x_item + B * T * C * out_item
                 + (B * T * N * out_item if return_attn else 0)
                 + grid[0] * (T * C + num_refine * C * C) * out_item)

    outs = pl.pallas_call(
        kernel,
        out_shape=tuple(out_shape),
        grid_spec=pltpu.PrefetchScalarGridSpec(
            num_scalar_prefetch=0,
            grid=grid,
            in_specs=in_specs,
            out_specs=out_specs,
        ),
        compiler_params=pltpu.CompilerParams(
            dimension_semantics=("parallel",),   # batch axis -> megacore/TCs
            vmem_limit_bytes=vmem_limit),
        cost_estimate=pl.CostEstimate(flops=int(flops),
                                      transcendentals=int(transc),
                                      bytes_accessed=int(bytes_acc)),
    )(*args)

    if return_attn:
        tokens_tc, attn_tn = outs
    else:
        (tokens_tc,) = outs
        attn_tn = None

    tokens = jnp.transpose(tokens_tc, (0, 2, 1))        # (B, C, T) — tiny
    if not return_attn:
        return tokens, None
    if attn_layout == "tn":
        return tokens, attn_tn                          # (B, T, N), no extra pass
    # Torch-compatible layout: one XLA transpose of the large attn output.
    return tokens, jnp.transpose(attn_tn, (0, 2, 1))    # (B, N, T)


def tokenizer_reference(x, w_attn, w_maps=None):
    """Pure-JAX reference mirroring the PyTorch forward, for validation."""
    B, C, H, W = x.shape
    xf = x.reshape(B, C, -1)                                         # (B, C, N)
    logits = jnp.einsum("tc,bcn->btn", w_attn, xf)                   # (B, T, N)
    attn = jax.nn.softmax(jnp.transpose(logits, (0, 2, 1)), axis=1)  # (B, N, T)
    tokens = jnp.einsum("bcn,bnt->bct", xf, attn)                    # (B, C, T)
    if w_maps is not None:
        for l in range(w_maps.shape[0]):
            tokens = jnp.einsum("dc,bct->bdt", w_maps[l], tokens)
            logits = jnp.einsum("bct,bcn->btn", tokens, xf)
            attn = jax.nn.softmax(jnp.transpose(logits, (0, 2, 1)), axis=1)
            tokens = jnp.einsum("bcn,bnt->bct", xf, attn)
    return tokens, attn


if __name__ == "__main__":
    key = jax.random.PRNGKey(0)
    kx, kw, km = jax.random.split(key, 3)

    # small shapes consistent with the module: batch=2, channels=8, 16x16, 16 tokens
    B, C, H, W = 2, 8, 16, 16
    T = 16          # tokens
    LAYERS = 2      # exercises one token_map refinement layer

    x = jax.random.normal(kx, (B, C, H, W), dtype=jnp.float32)
    w_attn = 0.1 * jax.random.normal(kw, (T, C), dtype=jnp.float32)
    w_maps = 0.1 * jax.random.normal(km, (LAYERS - 1, C, C), dtype=jnp.float32)

    ref_tok1, ref_attn1 = tokenizer_reference(x, w_attn)
    ref_tok2, ref_attn2 = tokenizer_reference(x, w_attn, w_maps)

    # f32 parity path, layers=1 (default Tokenizer config: no token_maps)
    tok1, attn1 = tokenizer_forward(x, w_attn, compute_dtype=jnp.float32)
    jax.block_until_ready((tok1, attn1))
    assert tok1.shape == (B, C, T) and attn1.shape == (B, H * W, T)
    assert jnp.allclose(tok1, ref_tok1, atol=1e-3, rtol=1e-2)
    assert jnp.allclose(attn1, ref_attn1, atol=1e-4, rtol=1e-2)

    # f32 parity path, layers=2 (one refinement Linear), exact reciprocal
    tok2, attn2 = tokenizer_forward(x, w_attn, w_maps,
                                    compute_dtype=jnp.float32,
                                    approx_recip=False)
    jax.block_until_ready((tok2, attn2))
    assert jnp.allclose(tok2, ref_tok2, atol=1e-3, rtol=1e-2)
    assert jnp.allclose(attn2, ref_attn2, atol=1e-4, rtol=1e-2)

    # default (bf16 compute/IO) path, layers=2 — halves x/attn HBM traffic
    tok3, attn3 = tokenizer_forward(x, w_attn, w_maps)
    jax.block_until_ready((tok3, attn3))
    assert jnp.allclose(tok3.astype(jnp.float32), ref_tok2, atol=5e-2, rtol=5e-2)
    assert jnp.allclose(attn3.astype(jnp.float32), ref_attn2, atol=5e-3, rtol=5e-2)

    # fast attn layout: kernel-native (B, T, N), no post-kernel transpose
    tok4, attn4 = tokenizer_forward(x, w_attn, compute_dtype=jnp.float32,
                                    attn_layout="tn")
    jax.block_until_ready((tok4, attn4))
    assert attn4.shape == (B, T, H * W)
    assert jnp.allclose(jnp.transpose(attn4, (0, 2, 1)), ref_attn1,
                        atol=1e-4, rtol=1e-2)

    # attn not consumed downstream -> skip writing it entirely
    tok5, attn5 = tokenizer_forward(x, w_attn, compute_dtype=jnp.float32,
                                    return_attn=False)
    jax.block_until_ready(tok5)
    assert attn5 is None
    assert jnp.allclose(tok5, ref_tok1, atol=1e-3, rtol=1e-2)

    print("KERNEL_OK")
</pallas_src>

<mosaic_0001>
module attributes {stable_mosaic.version = 11 : i64} {
  func.func @_tokenizer_kernel(%arg0: i32, %arg1: memref<16x8xf32, #tpu.memory_space<vmem>>, %arg2: memref<1x8x256xf32, #tpu.memory_space<vmem>>, %arg3: memref<1x16x8xf32, #tpu.memory_space<vmem>>, %arg4: memref<1x16x256xf32, #tpu.memory_space<vmem>>) attributes {dimension_semantics = [#tpu.dimension_semantics<parallel>], iteration_bounds = array<i64: 2>, scalar_prefetch = 0 : i64, scratch_operands = 0 : i64, tpu.core_type = #tpu.core_type<tc>, window_params = [{pipeline_mode = #tpu.pipeline_mode<synchronous>, transform_indices = @transform_0, window_bounds = array<i64: 16, 8>}, {transform_indices = @transform_1, window_bounds = array<i64: 1, 8, 256>}, {transform_indices = @transform_2, window_bounds = array<i64: 1, 16, 8>}, {transform_indices = @transform_3, window_bounds = array<i64: 1, 16, 256>}]} {
    %c0 = arith.constant 0 : index
    %c0_0 = arith.constant 0 : index
    %0 = vector.load %arg1[%c0, %c0_0] : memref<16x8xf32, #tpu.memory_space<vmem>>, vector<16x8xf32>
    %c0_i32 = arith.constant 0 : i32
    %1 = arith.index_cast %c0_i32 : i32 to index
    %c0_1 = arith.constant 0 : index
    %c0_2 = arith.constant 0 : index
    %2 = vector.load %arg2[%1, %c0_1, %c0_2] : memref<1x8x256xf32, #tpu.memory_space<vmem>>, vector<1x8x256xf32>
    %3 = vector.shape_cast %2 : vector<1x8x256xf32> to vector<8x256xf32>
    %cst = arith.constant dense<0.000000e+00> : vector<16x256xf32>
    %4 = tpu.matmul %0, %3, %cst {dimension_numbers = #tpu.dot_dimension_numbers<[1], [0], [0], [1], [0, 0, 1, 1], [], []>} : vector<16x8xf32>, vector<8x256xf32>, vector<16x256xf32> -> vector<16x256xf32>
    %cst_3 = arith.constant dense<0xFF800000> : vector<16xf32>
    %5 = vector.multi_reduction <maximumf>, %4, %cst_3 [1] : vector<16x256xf32> to vector<16xf32>
    %6 = vector.shape_cast %5 : vector<16xf32> to vector<16x1xf32>
    %7 = vector.broadcast %6 : vector<16x1xf32> to vector<16x256xf32>
    %8 = arith.subf %4, %7 : vector<16x256xf32>
    %9 = math.exp %8 : vector<16x256xf32>
    %cst_4 = arith.constant dense<0.000000e+00> : vector<16xf32>
    %10 = vector.multi_reduction <add>, %9, %cst_4 [1] : vector<16x256xf32> to vector<16xf32>
    %11 = vector.shape_cast %10 : vector<16xf32> to vector<16x1xf32>
    %12 = tpu.reciprocal %11 {approx = true} : vector<16x1xf32> -> vector<16x1xf32>
    %13 = vector.broadcast %12 : vector<16x1xf32> to vector<16x256xf32>
    %14 = arith.mulf %9, %13 : vector<16x256xf32>
    %cst_5 = arith.constant dense<0.000000e+00> : vector<16x8xf32>
    %15 = tpu.matmul %14, %3, %cst_5 {dimension_numbers = #tpu.dot_dimension_numbers<[1], [1], [0], [0], [0, 0, 1, 0], [], []>} : vector<16x256xf32>, vector<8x256xf32>, vector<16x8xf32> -> vector<16x8xf32>
    %16 = arith.index_cast %c0_i32 : i32 to index
    %c0_6 = arith.constant 0 : index
    %c0_7 = arith.constant 0 : index
    %17 = vector.load %arg3[%16, %c0_6, %c0_7] : memref<1x16x8xf32, #tpu.memory_space<vmem>>, vector<1x16x8xf32>
    %18 = vector.shape_cast %17 : vector<1x16x8xf32> to vector<16x8xf32>
    %19 = vector.shape_cast %15 : vector<16x8xf32> to vector<1x16x8xf32>
    tpu.vector_store %arg3[%16, %c0_6, %c0_7], %19 {strides = array<i32>} : memref<1x16x8xf32, #tpu.memory_space<vmem>>, vector<1x16x8xf32>,
    %20 = arith.index_cast %c0_i32 : i32 to index
    %c0_8 = arith.constant 0 : index
    %c0_9 = arith.constant 0 : index
    %21 = vector.load %arg4[%20, %c0_8, %c0_9] : memref<1x16x256xf32, #tpu.memory_space<vmem>>, vector<1x16x256xf32>
    %22 = vector.shape_cast %21 : vector<1x16x256xf32> to vector<16x256xf32>
    %23 = vector.shape_cast %14 : vector<16x256xf32> to vector<1x16x256xf32>
    tpu.vector_store %arg4[%20, %c0_8, %c0_9], %23 {strides = array<i32>} : memref<1x16x256xf32, #tpu.memory_space<vmem>>, vector<1x16x256xf32>,
    %c1_i32 = arith.constant 1 : i32
    return
  }
  func.func @transform_0(%arg0: i32) -> (i32, i32) {
    %c0_i32 = arith.constant 0 : i32
    %c0_i32_0 = arith.constant 0 : i32
    %c0_i32_1 = arith.constant 0 : i32
    return %c0_i32, %c0_i32_0 : i32, i32
  }
  func.func @transform_1(%arg0: i32) -> (i32, i32, i32) {
    %c0_i32 = arith.constant 0 : i32
    %c0_i32_0 = arith.constant 0 : i32
    %c0_i32_1 = arith.constant 0 : i32
    return %arg0, %c0_i32, %c0_i32_0 : i32, i32, i32
  }
  func.func @transform_2(%arg0: i32) -> (i32, i32, i32) {
    %c0_i32 = arith.constant 0 : i32
    %c0_i32_0 = arith.constant 0 : i32
    %c0_i32_1 = arith.constant 0 : i32
    return %arg0, %c0_i32, %c0_i32_0 : i32, i32, i32
  }
  func.func @transform_3(%arg0: i32) -> (i32, i32, i32) {
    %c0_i32 = arith.constant 0 : i32
    %c0_i32_0 = arith.constant 0 : i32
    %c0_i32_1 = arith.constant 0 : i32
    return %arg0, %c0_i32, %c0_i32_0 : i32, i32, i32
  }
}

</mosaic_0001>

<bundles_post_ra>
// kernel: tpu_custom_call.1
= control target key start
LH: loop header
LB: loop body
LE: loop exit
PB: predicated region body
PF: predicated region fallthrough
CT: control target
= control target key end

     0   :  { %9 = vsyncpa [#allocation3], 0  ;;  %s903_s0 = inlined_call_operand.vmem [shape: f32[16,8], index: 0, kind: input, shape index: {}]   ;;  %s904_s1 = inlined_call_operand.hbm [shape: f32[2,8,256], index: 1, kind: input, shape index: {}]   ;;  %s905_s2 = inlined_call_operand.vmem [shape: f32[2,16,8], index: 2, kind: output, shape index: {0}]   ;;  %s906_s3 = inlined_call_operand.hbm [shape: f32[2,16,256], index: 3, kind: output, shape index: {1}]  }
   0x1   :  { %11 = vsyncpa [#allocation3 + $0x1], 0 }
   0x2   :  { %12 = vsyncpa [#allocation4], 0 }
   0x3   :  { %14 = vsyncpa [#allocation4 + $0x1], 0  ;;  %s724_s12 = smov 0   ;;  %s726_s13 = smov 0  }
   0x4   :  { %s728_s14 = smov 0   ;;  %s730_s15 = smov 0  }
   0x5 LB: > { %s745_s16 = sadd.s32 4294967295, %s697_s15   ;;  %s519_s17 = sadd.s32 4294967294, %s697_s15   ;;  %s697_s15 = sphi %s730_s15, %s921_s15   ;;  %s693_s14 = sphi %s728_s14, %s920_s14   ;;  %s689_s13 = sphi %s726_s13, %s919_s13   ;;  %s685_s12 = sphi %s724_s12, %s918_s12  }
   0x6   : > { %s749_s18 = sadd.s32 1, %s697_s15   ;;  %s48_s19 = sadd.s32 1, %s693_s14 }
   0x7   : > { %s45_s20 = ssub.s32 %s697_s15, %s749_s18  ;;  %p55_p0 = scmp.ne.s32.totalorder %s693_s14, %s689_s13 }
   0x8   : > { %p46_p1 = scmp.eq.s32.totalorder %s45_s20, 0  ;;  %p56_p2 = scmp.eq.s32.totalorder %s697_s15, 0 }
   0x9   : > { %p61_p3 = scmp.ne.s32.totalorder %s689_s13, %s685_s12  ;;  %p62_p4 = scmp.eq.s32.totalorder %s745_s16, 0 }
   0xa   : > { %s761_s21 = scalar_select %p46_p1, %s693_s14, %s48_s19  }
   0xb   : > { %p763_p5 = por %p56_p2, %p55_p0  ;;  %p767_p6 = por %p62_p4, %p61_p3 }
   0xc   : > { %p111_p7 = scmp.eq.s32.totalorder %s745_s16, 1  ;;  %p117_p8 = scmp.eq.s32.totalorder %s519_s17, 1 }
   0xd   : > { %p552_p10 = scmp.lt.s32.totalorder %s697_s15, 2  ;;  %s140_s26 = sand.u32 1, %s693_s14  }
   0xe   : > { %p774_p11 = por %p111_p7, %p55_p0  ;;  %p778_p12 = por %p117_p8, %p61_p3 }
   0xf   : > { %s537_s27 = sshll.u32 %s697_s15, 8  ;;  %s522_s28 = sshll.u32 %s140_s26, 4 }
  0x10   : > { %s910_s24 = scalar_select %p774_p11, 1, 0 }
  0x11   : > { %s911_s25 = scalar_select %p778_p12, 1, 0 }
  0x12   : > { %s787_s4 = scalar_lea.hbm %s904_s1, %s537_s27  ;;  %s144_s5 = scalar_lea.vmem [#allocation2], %s522_s28 }
  0x13   : > { %s152_s6 = sshll.u32 %s144_s5, 4  ;;  %p791_p13 = pnand %p552_p10, %p763_p5  ;;  %s795_s6 = int_to_ptr.vmem [resolvable:$true] %s152_s6 }
  0x14   : > { %s141_s8 = scalar_lea.sflag [#allocation3], %s140_s26  ;;  %s601_s9 = scalar_lea.hbm %s787_s4, 256 }
  0x15   : > { %p602_p2 = scmp.ne.s32.totalorder %s787_s4, %s601_s9  ;;  %p603_p3 = pneg %p791_p13 }
  0x16   : > { %s606_s17 = scalar_lea.hbm %s904_s1, 512  ;;  %p607_p5 = scmp.lt.u32.totalorder %s787_s4, %s904_s1 }
  0x17   : > { %p604_p4 = pnand %p603_p3, %p602_p2  ;;  %p608_p8 = scmp.lt.u32.totalorder %s606_s17, %s601_s9 }
  0x18   : > { %p610_p9 = scmp.lt.u32.totalorder %s601_s9, %s787_s4 }
  0x19   : > { %p605_p7 = pneg %p604_p4  ;;  %p609_p10 = por %p608_p8, %p607_p5 }
  0x1b   : > { %p611_p0 = por %p610_p9, %p609_p10 }
  0x1d   : > { %p612_p1 = pnand %p611_p0, %p605_p7 }
  0x1f   : > { %615 = shalt.err (!%p612_p1)
}
  0x20   : > { %s616_s22 = scalar_lea.vmem %s795_s6, 256  ;;  %s699_s26 = smov [#allocation2]  }
  0x21   : > { %p617_p2 = scmp.ne.s32.totalorder %s795_s6, %s616_s22  ;;  %s621_s27 = sshll.u32 %s699_s26, 4  ;;  %s622_s27 = int_to_ptr.vmem [resolvable:$false] %s621_s27 }
  0x22   : > { %s623_s28 = scalar_lea.vmem %s622_s27, 512  ;;  %p624_p11 = scmp.lt.s32.totalorder %s795_s6, %s622_s27 }
  0x23   : > { %p619_p4 = pnand %p617_p2, %p603_p3  ;;  %p625_p5 = scmp.lt.s32.totalorder %s623_s28, %s616_s22 }
  0x25   : > { %p620_p12 = pneg %p619_p4  ;;  %p626_p8 = por %p625_p5, %p624_p11 }
  0x27   : > { %p627_p9 = pnand %p626_p8, %p620_p12 }
  0x29   : > { %630 = shalt.err (!%p627_p9)
}
  0x2a   : > { %547 = dma.hbm_to_vmem [thread:$0]  (!%p791_p13), %s787_s4, 256, %s795_s6, %s141_s8  }
  0x2b   : > { %p913_p0 = scmp.lt.s32.totalorder %s697_s15, 3  ;;  %p914_p1 = scmp.ge.s32.totalorder %s697_s15, 1 }
  0x2d   : > { %p158_p3 = pnand %p914_p1, %p913_p0 }
  0x2e   : > { %s829_s29 = sand.u32 (!%p158_p3), 1, %s689_s13  }
  0x2f   : > { %161 = sbr.rel (%p158_p3) target bundleno = 806 (0x326), region = 28  ;;  %s526_s30 = sshll.u32 (!%p158_p3), %s829_s29, 4 }
  0x30   : > { %s164_s5 = scalar_lea.sflag (!%p158_p3), [#allocation3], %s829_s29  ;;  %s167_s9 = scalar_lea.vmem (!%p158_p3), [#allocation2], %s526_s30 }
  0x36   : > { %676 = dma.done.wait (%p767_p6), %s164_s5, 256  }
  0x37   : > { %678 = vsyncadd (%p767_p6), %s164_s5, 4294967040  ;;  %v700_v0 = vmov 0.0   ;;  %v203_v1 = vld [vmem:[%s167_s9 + $0x8] sm:$0xff]  ;;  %v202_v2 = vld [vmem:[%s167_s9] sm:$0xff]  ;;  %vm204_vm0 = vcmask 64512   ;;  %s527_s23 = sshll.u32 %s829_s29, 5 }
  0x38   : > { %275 = vmatprep.mubr.f32.mxu0 %v700_v0  ;;  %v200_v3 = vld [vmem:[%s903_s0] sm:$0xff]  ;;  %211 = vmatprep.subr.mxu0 %v203_v1  ;;  %v201_v4 = vld [vmem:[%s903_s0 + $0x8] sm:$0xff]  ;;  %s194_s10 = scalar_lea.vmem [#allocation5], %s527_s23  ;;  %s539_s17 = sshll.u32 %s745_s16, 9 }
  0x39   : > { %318 = vmatprep.subr.mxu1 %v203_v1  ;;  %212 = vmatpush1.msra.mxu0 %v202_v2  ;;  %s421_s11 = sshll.u32 %s194_s10, 4  ;;  %s852_s22 = scalar_lea.hbm %s906_s3, %s539_s17  ;;  %s846_s11 = int_to_ptr.vmem [resolvable:$true] %s421_s11 }
  0x3a   : > { %319 = vmatpush1.xpose.msra.mxu1 %v202_v2  ;;  %530 = vmatmul.mubr.msk.f32.vlgmr.msra.gmra.mrb[0].mxu0 %vm204_vm0, %v200_v3  ;;  %s405_s26 = scalar_lea.sflag [#allocation4], %s829_s29  ;;  %s631_s27 = scalar_lea.vmem %s846_s11, 512 }
  0x3b   : > { %281 = vmatprep.mubr.f32.mxu0 %v700_v0  ;;  %p632_p6 = scmp.ne.s32.totalorder %s846_s11, %s631_s27  ;;  %p915_p11 = scmp.ne.s32.totalorder %s910_s24, 0 }
  0x3c   : > { %s701_s28 = smov [#allocation5]  }
  0x3d   : > { %p633_p12 = pnand %p632_p6, %p915_p11  ;;  %s635_s30 = sshll.u32 %s701_s28, 4  ;;  %s636_s30 = int_to_ptr.vmem [resolvable:$false] %s635_s30 }
  0x3e   : > { %531 = vmatmul.mubr.msk.f32.gmra.mrb[2].mxu0 %vm204_vm0, %v201_v4  ;;  %s637_s5 = scalar_lea.vmem %s636_s30, 1024  ;;  %p638_p7 = scmp.lt.s32.totalorder %s846_s11, %s636_s30 }
  0x3f   : > { %p634_p13 = pneg %p633_p12  ;;  %p639_p10 = scmp.lt.s32.totalorder %s637_s5, %s631_s27 }
  0x41   : > { %p640_p2 = por %p639_p10, %p638_p7 }
  0x43   : > { %p641_p4 = pnand %p640_p2, %p634_p13 }
 0x10d   : > { %v277_v5 = vpop.f32.mrb[0].mxu0 }
 0x10e   : > { %v279_v6 = vpop.f32.mrb[1].mxu0 }
 0x10f   : > { %v288_v7 = vmax.f32 %v277_v5, %v279_v6 }
 0x111   : > { %289 = vmax.xlane.f32.xlu0 %v288_v7  ;;  %v283_v8 = vpop.f32.mrb[2].mxu0 }
 0x112   : > { %v285_v9 = vpop.f32.mrb[3].mxu0 }
 0x113   : > { %v291_v10 = vmax.f32 %v283_v8, %v285_v9 }
 0x115   : > { %292 = vmax.xlane.f32.xlu0 %v291_v10 }
 0x19e   : > { %v290_v11 = vpop.xlane.xlu0 %289 }
 0x19f   : > { %v294_v12 = vsub.f32 %v277_v5, %v290_v11  ;;  %v295_v13 = vsub.f32 %v279_v6, %v290_v11 }
 0x1a1   : > { %v298_v14 = vmul.f32 1.442695, %v294_v12  ;;  %v300_v15 = vmul.f32 1.442695, %v295_v13 }
 0x1a2   : > { %v293_v16 = vpop.xlane.xlu0 %292 }
 0x1a3   : > { %589 = vpow2.f32 %v298_v14  ;;  %v296_v17 = vsub.f32 %v283_v8, %v293_v16  ;;  %v297_v18 = vsub.f32 %v285_v9, %v293_v16 }
 0x1a4   : > { %591 = vpow2.f32 %v300_v15 }
 0x1a5   : > { %v302_v19 = vmul.f32 1.442695, %v296_v17  ;;  %v304_v20 = vmul.f32 1.442695, %v297_v18 }
 0x1a7   : > { %593 = vpow2.f32 %v302_v19 }
 0x1a8   : > { %595 = vpow2.f32 %v304_v20 }
 0x1ad   : > { %v590_v21 = vpop.eup %589 }
 0x1ae   : > { %v592_v22 = vpop.eup %591 }
 0x1af   : > { %v306_v23 = vadd.f32 %v592_v22, %v590_v21 }
 0x1b1   : > { %v594_v24 = vpop.eup %593  ;;  %307 = vadd.xlane.f32.xlu1 %v306_v23 }
 0x1b2   : > { %v596_v25 = vpop.eup %595 }
 0x1b3   : > { %v309_v26 = vadd.f32 %v596_v25, %v594_v24 }
 0x1b5   : > { %310 = vadd.xlane.f32.xlu1 %v309_v26 }
 0x23e   : > { %v308_v27 = vpop.xlane.xlu1 %307 }
 0x23f   : > { %597 = vrcp.f32 %v308_v27 }
 0x242   : > { %v311_v28 = vpop.xlane.xlu1 %310 }
 0x243   : > { %599 = vrcp.f32 %v311_v28 }
 0x249   : > { %v598_v29 = vpop.eup %597 }
 0x24a   : > { %v315_v30 = vmul.f32 %v598_v29, %v592_v22  ;;  %v314_v31 = vmul.f32 %v598_v29, %v590_v21 }
 0x24c   : > { %382 = vmatprep.mubr.f32.mxu1 %v315_v30  ;;  %396 = vst [vmem:[%s194_s10 + $0x8] sm:$0xff] %v315_v30  ;;  %395 = vst [vmem:[%s194_s10] sm:$0xff] %v314_v31 }
 0x24d   : > { %v600_v32 = vpop.eup %599  ;;  %383 = vmatmul.mubr.f32.vlgmr.msra.gmra.mrb[0].mxu1 %v314_v31 }
 0x24e   : > { %v317_v33 = vmul.f32 %v600_v32, %v596_v25  ;;  %v316_v34 = vmul.f32 %v600_v32, %v594_v24 }
 0x250   : > { %387 = vmatprep.mubr.f32.mxu1 %v317_v33  ;;  %398 = vst [vmem:[%s194_s10 + $0x18] sm:$0xff] %v317_v33  ;;  %397 = vst [vmem:[%s194_s10 + $0x10] sm:$0xff] %v316_v34 }
 0x251   : > { %388 = vmatmul.mubr.f32.gmra.mrb[2].mxu1 %v316_v34 }
 0x252   : > { %644 = shalt.err (!%p641_p4)
}
 0x253   : > { %s645_s9 = scalar_lea.hbm %s852_s22, 512  ;;  %s649_s7 = scalar_lea.hbm %s906_s3, 1024 }
 0x254   : > { %p646_p5 = scmp.ne.s32.totalorder %s852_s22, %s645_s9  ;;  %p650_p0 = scmp.lt.u32.totalorder %s852_s22, %s906_s3 }
 0x255   : > { %p651_p1 = scmp.lt.u32.totalorder %s649_s7, %s645_s9  ;;  %p653_p6 = scmp.lt.u32.totalorder %s645_s9, %s852_s22 }
 0x256   : > { %p647_p8 = pnand %p646_p5, %p915_p11 }
 0x257   : > { %p652_p3 = por %p651_p1, %p650_p0 }
 0x258   : > { %p648_p9 = pneg %p647_p8 }
 0x259   : > { %p654_p12 = por %p653_p6, %p652_p3 }
 0x25b   : > { %p655_p13 = pnand %p654_p12, %p648_p9 }
 0x25d   : > { %658 = shalt.err (!%p655_p13)
}
 0x25e   : > { %s702_s10 = smov 256   ;;  %s703_s17 = smov 16  }
 0x25f   : > { %542 = dma.vmem_to_hbm [thread:$0]  (%p915_p11), %s846_s11, 512, %s852_s22, %s405_s26, %s702_s10, %s702_s10, %s703_s17  }
 0x260   : > { %p195_p7 = scmp.lt.s32.totalorder %s745_s16, 1 }
 0x262   : > { %s923_s16 = smov (!%p195_p7, %s745_s16), 1 }
 0x263   : > { %s538_s19 = sshll.u32 %s923_s16, 4 }
 0x264   : > { %s199_s28 = scalar_lea.vmem %s905_s2, %s538_s19 }
 0x320   : > { %v384_v35 = vpop.f32.mrb[0].mxu1 }
 0x321   : > { %393 = vst.msk [vmem:[%s199_s28] sm:$0xff] %vm204_vm0, %v384_v35  ;;  %v386_v36 = vpop.f32.mrb[1].mxu1 }
 0x324   : > { %v389_v37 = vpop.f32.mrb[2].mxu1 }
 0x325   : > { %394 = vst.msk [vmem:[%s199_s28 + $0x8] sm:$0xff] %vm204_vm0, %v389_v37  ;;  %v391_v38 = vpop.f32.mrb[3].mxu1 }
 0x326 PF: > { %s444_s24 = sand.u32 1, %s685_s12   ;;  %p916_p11 = scmp.ne.s32.totalorder %s911_s25, 0 }
 0x327   : > { %p917_p10 = scmp.ge.s32.totalorder %s697_s15, 2  ;;  %s445_s16 = scalar_lea.sflag [#allocation4], %s444_s24 }
 0x329   : > { %p549_p2 = pnand %p917_p10, %p916_p11 }
 0x32b   : > { %680 = dma.done.wait (!%p549_p2), %s445_s16, 512  }
 0x32c   : > { %682 = vsyncadd (!%p549_p2), %s445_s16, 4294966784  ;;  %p17_p4 = scmp.ge.s32.totalorder %s749_s18, 4   ;;  %s918_s12 = smov %s689_s13 }
 0x32d   : > { %s919_s13 = smov %s693_s14  ;;  %s920_s14 = smov %s761_s21 }
 0x32e   : > { %s921_s15 = smov %s749_s18  ;;  %19 = sbr.rel (!%p17_p4) target bundleno = 5 (0x5), region = 85 }
 0x335   :  { %450 = vsyncpa [#allocation3], 1 }
 0x336   :  { %452 = vsyncpa [#allocation3 + $0x1], 1 }
 0x337   :  { %453 = vsyncpa [#allocation4], 1 }
 0x338   :  { %455 = vsyncpa [#allocation4 + $0x1], 1 }

</bundles_post_ra>
